<compile_context>
chip_gen: v6e
topology: v6e:2x2x1
jax: 0.10.0
libtpu: 0.0.40
codegen_flags: <defaults>
</compile_context>

<pallas_src>
import functools

import jax
import jax.numpy as jnp
from jax.experimental import pallas as pl
from jax.experimental.pallas import tpu as pltpu


def _round_up(x, m):
    return ((x + m - 1) // m) * m


def _vmem_capacity_bytes():
    """Best-effort physical VMEM query; falls back to the v7x-safe 64 MiB."""
    try:
        info = pltpu.get_tpu_info()
        for attr in ("vmem_capacity_bytes", "vmem_size_bytes", "vmem_bytes"):
            val = getattr(info, attr, None)
            if val:
                return int(val)
    except Exception:
        pass
    return 64 * 1024 * 1024


def _tile_counts(idx, tv, v_base):
    """counts[b, j] = #{ l : idx[b, l] == v_base + j }, returned as f32."""
    b_pad, num_ids = idx.shape
    vid = jax.lax.broadcasted_iota(jnp.int32, (b_pad, tv), 1) + v_base
    counts = jnp.zeros((b_pad, tv), jnp.int32)
    # TODO(synk): for long histories (L >> 32) switch to lax.fori_loop(..., unroll=8)
    # so vreg live ranges stay bounded; static unroll is fine at CTR-style L.
    for l in range(num_ids):
        counts = counts + (idx[:, l:l + 1] == vid).astype(jnp.int32)
    return counts.astype(jnp.float32)


def _embed_mean_kernel_nv1(tmap_ref, idx_ref, table_ref, out_ref, *, inv_l):
    # Whole vocab fits in one tile: single counts-matmul, no reduction machinery.
    del tmap_ref  # only used by the index_maps
    counts = _tile_counts(idx_ref[...], table_ref.shape[0], 0)
    out_ref[...] = jnp.dot(counts, table_ref[...],
                           preferred_element_type=jnp.float32) * inv_l


def _embed_mean_kernel_tiled(tmap_ref, idx_ref, table_ref, out_ref, *, inv_l):
    # Vocab-tiled reduction; accumulate directly into the resident out_ref block.
    del tmap_ref
    v = pl.program_id(1)
    tv = table_ref.shape[0]
    counts = _tile_counts(idx_ref[...], tv, v * tv)
    contrib = jnp.dot(counts, table_ref[...], preferred_element_type=jnp.float32)

    @pl.when(v == 0)
    def _():
        out_ref[...] = contrib

    @pl.when(v != 0)
    def _():
        out_ref[...] += contrib

    @pl.when(v == pl.num_programs(1) - 1)
    def _():
        out_ref[...] = out_ref[...] * inv_l


def fused_embedding_mean(tmap, idx_stack, table_stack, *, tv, vmem_limit_bytes):
    """Mean-pooled embedding lookup for all features in a single pallas_call.

    tmap:        (F,)            int32   feature -> unique-table index (prefetched to SMEM)
    idx_stack:   (F, B_pad, L)   int32
    table_stack: (T, V_pad, E)   float32 unique tables, zero-padded rows; V_pad % tv == 0
    returns      (F, B_pad, E)   float32
    """
    F, b_pad, L = idx_stack.shape
    _, v_pad, e = table_stack.shape
    assert v_pad % tv == 0
    nv = v_pad // tv
    inv_l = 1.0 / L

    # Executed work (counts compares/adds + the full padded matmul), not just the
    # useful gather flops — keeps XLA's overlap decisions honest.
    cost = pl.CostEstimate(
        flops=2 * F * b_pad * v_pad * e + 2 * F * b_pad * L * v_pad,
        transcendentals=0,
        bytes_accessed=(idx_stack.size * 4
                        + F * v_pad * e * 4        # upper bound: table streamed per feature
                        + F * b_pad * e * 4),
    )

    if nv == 1:
        kernel = functools.partial(_embed_mean_kernel_nv1, inv_l=inv_l)
        grid = (F,)
        in_specs = [
            pl.BlockSpec((pl.Squeezed(), b_pad, L), lambda f, tm: (f, 0, 0)),
            pl.BlockSpec((pl.Squeezed(), v_pad, e), lambda f, tm: (tm[f], 0, 0)),
        ]
        out_specs = pl.BlockSpec((pl.Squeezed(), b_pad, e), lambda f, tm: (f, 0, 0))
        dims = ("parallel",)
    else:
        kernel = functools.partial(_embed_mean_kernel_tiled, inv_l=inv_l)
        grid = (F, nv)
        in_specs = [
            pl.BlockSpec((pl.Squeezed(), b_pad, L), lambda f, v, tm: (f, 0, 0)),
            pl.BlockSpec((pl.Squeezed(), tv, e), lambda f, v, tm: (tm[f], v, 0)),
        ]
        out_specs = pl.BlockSpec((pl.Squeezed(), b_pad, e),
                                 lambda f, v, tm: (f, 0, 0))
        dims = ("parallel", "arbitrary")

    return pl.pallas_call(
        kernel,
        out_shape=jax.ShapeDtypeStruct((F, b_pad, e), jnp.float32),
        grid_spec=pltpu.PrefetchScalarGridSpec(
            num_scalar_prefetch=1,
            grid=grid,
            in_specs=in_specs,
            out_specs=out_specs,
        ),
        compiler_params=pltpu.CompilerParams(
            dimension_semantics=dims,
            vmem_limit_bytes=vmem_limit_bytes,
        ),
        cost_estimate=cost,
    )(tmap, idx_stack, table_stack)


class EmbeddingLayer:
    """JAX/Pallas port of scarabs EmbeddingLayer (mean-pooled embeddings per feature)."""

    def __init__(self, features, embedding_size, key):
        self.features = features
        self.embedding_size = embedding_size
        self.names = list(features.keys())

        # Per-owner tables (torch.nn.init.normal_(weight, std=0.0001)).
        self.tables = {}
        table_id = {}
        owner_names = []
        for name, feature in features.items():
            if feature["shared_embed_name"] is not None:
                continue
            key, sub = jax.random.split(key)
            vocab_size = len(feature["vocab"])
            self.tables[name] = 0.0001 * jax.random.normal(
                sub, (vocab_size, embedding_size), jnp.float32)
            table_id[name] = len(owner_names)
            owner_names.append(name)

        # Feature -> unique-table index (shared embeddings resolved, no duplication).
        feat_tid = {}
        for name, feature in features.items():
            owner = (name if feature["shared_embed_name"] is None
                     else feature["shared_embed_name"])
            feat_tid[name] = table_id[owner]

        # Order features so same-table features are adjacent in the grid: the table
        # block index is then unchanged across those steps and Pallas skips the DMA.
        self.feature_order = sorted(self.names, key=lambda n: feat_tid[n])
        self.tmap = jnp.array([feat_tid[n] for n in self.feature_order], jnp.int32)

        # Derive vocab tile + VMEM limit from the chip generation (v7x: 64 MiB
        # physical, v5e/v6e: 128 MiB) instead of hard-coding them.
        vmem_cap = _vmem_capacity_bytes()
        self.vmem_limit_bytes = int(min(vmem_cap * 3 // 4, 100 * 1024 * 1024))
        row_bytes = embedding_size * 4
        tv_cap = max(8, ((self.vmem_limit_bytes // 4) // (2 * row_bytes)) // 8 * 8)
        tv_cap = min(tv_cap, 4096)  # bound counts working set / per-step VALU work

        unique_tables = [self.tables[n] for n in owner_names]
        v_max = max(t.shape[0] for t in unique_tables)
        v_pad8 = _round_up(v_max, 8)
        if v_pad8 <= tv_cap:
            self.tv = v_pad8            # whole vocab in one tile -> nv == 1 fast path
            self.v_pad = v_pad8
        else:
            self.tv = tv_cap
            self.v_pad = _round_up(v_max, self.tv)

        # Unique, row-padded (not E-padded!) table stack: (T, V_pad, E).
        self.table_stack = jnp.stack(
            [jnp.pad(t, ((0, self.v_pad - t.shape[0]), (0, 0)))
             for t in unique_tables], axis=0)

    def __call__(self, **kwargs):
        idxs = [kwargs[name].astype(jnp.int32) for name in self.feature_order]
        B, L = idxs[0].shape
        b_pad = _round_up(B, 8)  # sublane-align the batch
        idx_stack = jnp.stack(
            [jnp.pad(x, ((0, b_pad - B), (0, 0))) for x in idxs], axis=0)

        out = fused_embedding_mean(self.tmap, idx_stack, self.table_stack,
                                   tv=self.tv,
                                   vmem_limit_bytes=self.vmem_limit_bytes)

        return {name: out[i, :B, :] for i, name in enumerate(self.feature_order)}


def _reference(features, tables, inputs):
    out = {}
    for name, feature in features.items():
        table_name = (name if feature["shared_embed_name"] is None
                      else feature["shared_embed_name"])
        out[name] = jnp.mean(jnp.take(tables[table_name], inputs[name], axis=0), axis=1)
    return out


if __name__ == "__main__":
    features = {
        "user_id":   {"vocab": list(range(50)), "shared_embed_name": None},
        "item_id":   {"vocab": list(range(80)), "shared_embed_name": None},
        "hist_item": {"vocab": list(range(80)), "shared_embed_name": "item_id"},
    }
    embedding_size = 16
    B, L = 4, 8

    key = jax.random.PRNGKey(0)
    layer_key, data_key = jax.random.split(key)
    layer = EmbeddingLayer(features, embedding_size, layer_key)

    inputs = {}
    for name, feature in features.items():
        data_key, sub = jax.random.split(data_key)
        inputs[name] = jax.random.randint(
            sub, (B, L), 0, len(feature["vocab"]), dtype=jnp.int32)

    outputs = layer(**inputs)
    outputs = jax.tree_util.tree_map(jax.block_until_ready, outputs)

    ref = _reference(features, layer.tables, inputs)
    for name in features:
        assert outputs[name].shape == (B, embedding_size)
        assert outputs[name].dtype == jnp.float32
        assert jnp.allclose(outputs[name], ref[name], atol=1e-6, rtol=1e-5)

    print("KERNEL_OK")
</pallas_src>

<mosaic_0001>
module attributes {stable_mosaic.version = 11 : i64} {
  func.func @_embed_mean_kernel_nv1(%arg0: i32, %arg1: memref<3xi32, #tpu.memory_space<smem>>, %arg2: memref<1x8x8xi32, #tpu.memory_space<vmem>>, %arg3: memref<1x80x16xf32, #tpu.memory_space<vmem>>, %arg4: memref<1x8x16xf32, #tpu.memory_space<vmem>>) attributes {dimension_semantics = [#tpu.dimension_semantics<parallel>], iteration_bounds = array<i64: 3>, scalar_prefetch = 1 : i64, scratch_operands = 0 : i64, tpu.core_type = #tpu.core_type<tc>, window_params = [{transform_indices = @transform_0, window_bounds = array<i64: 1, 8, 8>}, {transform_indices = @transform_1, window_bounds = array<i64: 1, 80, 16>}, {transform_indices = @transform_2, window_bounds = array<i64: 1, 8, 16>}]} {
    %c0 = arith.constant 0 : index
    %c0_0 = arith.constant 0 : index
    %c0_1 = arith.constant 0 : index
    %0 = vector.load %arg2[%c0, %c0_0, %c0_1] : memref<1x8x8xi32, #tpu.memory_space<vmem>>, vector<1x8x8xi32>
    %1 = vector.shape_cast %0 : vector<1x8x8xi32> to vector<8x8xi32>
    %2 = tpu.iota {dimensions = array<i32: 1>} : vector<8x80xi32>
    %c0_i32 = arith.constant 0 : i32
    %3 = vector.broadcast %c0_i32 : i32 to vector<8x80xi32>
    %4 = arith.addi %2, %3 : vector<8x80xi32>
    %c0_i32_2 = arith.constant 0 : i32
    %5 = vector.broadcast %c0_i32_2 : i32 to vector<8x80xi32>
    %6 = vector.extract_strided_slice %1 {offsets = [0, 0], sizes = [8, 1], strides = [1, 1]} : vector<8x8xi32> to vector<8x1xi32>
    %7 = vector.broadcast %6 : vector<8x1xi32> to vector<8x80xi32>
    %8 = arith.cmpi eq, %7, %4 : vector<8x80xi32>
    %9 = arith.extui %8 : vector<8x80xi1> to vector<8x80xi32>
    %10 = arith.addi %5, %9 : vector<8x80xi32>
    %11 = vector.extract_strided_slice %1 {offsets = [0, 1], sizes = [8, 1], strides = [1, 1]} : vector<8x8xi32> to vector<8x1xi32>
    %12 = vector.broadcast %11 : vector<8x1xi32> to vector<8x80xi32>
    %13 = arith.cmpi eq, %12, %4 : vector<8x80xi32>
    %14 = arith.extui %13 : vector<8x80xi1> to vector<8x80xi32>
    %15 = arith.addi %10, %14 : vector<8x80xi32>
    %16 = vector.extract_strided_slice %1 {offsets = [0, 2], sizes = [8, 1], strides = [1, 1]} : vector<8x8xi32> to vector<8x1xi32>
    %17 = vector.broadcast %16 : vector<8x1xi32> to vector<8x80xi32>
    %18 = arith.cmpi eq, %17, %4 : vector<8x80xi32>
    %19 = arith.extui %18 : vector<8x80xi1> to vector<8x80xi32>
    %20 = arith.addi %15, %19 : vector<8x80xi32>
    %21 = vector.extract_strided_slice %1 {offsets = [0, 3], sizes = [8, 1], strides = [1, 1]} : vector<8x8xi32> to vector<8x1xi32>
    %22 = vector.broadcast %21 : vector<8x1xi32> to vector<8x80xi32>
    %23 = arith.cmpi eq, %22, %4 : vector<8x80xi32>
    %24 = arith.extui %23 : vector<8x80xi1> to vector<8x80xi32>
    %25 = arith.addi %20, %24 : vector<8x80xi32>
    %26 = vector.extract_strided_slice %1 {offsets = [0, 4], sizes = [8, 1], strides = [1, 1]} : vector<8x8xi32> to vector<8x1xi32>
    %27 = vector.broadcast %26 : vector<8x1xi32> to vector<8x80xi32>
    %28 = arith.cmpi eq, %27, %4 : vector<8x80xi32>
    %29 = arith.extui %28 : vector<8x80xi1> to vector<8x80xi32>
    %30 = arith.addi %25, %29 : vector<8x80xi32>
    %31 = vector.extract_strided_slice %1 {offsets = [0, 5], sizes = [8, 1], strides = [1, 1]} : vector<8x8xi32> to vector<8x1xi32>
    %32 = vector.broadcast %31 : vector<8x1xi32> to vector<8x80xi32>
    %33 = arith.cmpi eq, %32, %4 : vector<8x80xi32>
    %34 = arith.extui %33 : vector<8x80xi1> to vector<8x80xi32>
    %35 = arith.addi %30, %34 : vector<8x80xi32>
    %36 = vector.extract_strided_slice %1 {offsets = [0, 6], sizes = [8, 1], strides = [1, 1]} : vector<8x8xi32> to vector<8x1xi32>
    %37 = vector.broadcast %36 : vector<8x1xi32> to vector<8x80xi32>
    %38 = arith.cmpi eq, %37, %4 : vector<8x80xi32>
    %39 = arith.extui %38 : vector<8x80xi1> to vector<8x80xi32>
    %40 = arith.addi %35, %39 : vector<8x80xi32>
    %41 = vector.extract_strided_slice %1 {offsets = [0, 7], sizes = [8, 1], strides = [1, 1]} : vector<8x8xi32> to vector<8x1xi32>
    %42 = vector.broadcast %41 : vector<8x1xi32> to vector<8x80xi32>
    %43 = arith.cmpi eq, %42, %4 : vector<8x80xi32>
    %44 = arith.extui %43 : vector<8x80xi1> to vector<8x80xi32>
    %45 = arith.addi %40, %44 : vector<8x80xi32>
    %46 = arith.sitofp %45 : vector<8x80xi32> to vector<8x80xf32>
    %c0_3 = arith.constant 0 : index
    %c0_4 = arith.constant 0 : index
    %c0_5 = arith.constant 0 : index
    %47 = vector.load %arg3[%c0_3, %c0_4, %c0_5] : memref<1x80x16xf32, #tpu.memory_space<vmem>>, vector<1x80x16xf32>
    %48 = vector.shape_cast %47 : vector<1x80x16xf32> to vector<80x16xf32>
    %cst = arith.constant dense<0.000000e+00> : vector<8x16xf32>
    %49 = tpu.matmul %46, %48, %cst {dimension_numbers = #tpu.dot_dimension_numbers<[1], [0], [0], [1], [0, 0, 1, 1], [], []>} : vector<8x80xf32>, vector<80x16xf32>, vector<8x16xf32> -> vector<8x16xf32>
    %cst_6 = arith.constant 1.250000e-01 : f32
    %50 = vector.broadcast %cst_6 : f32 to vector<8x16xf32>
    %51 = arith.mulf %49, %50 : vector<8x16xf32>
    %c0_7 = arith.constant 0 : index
    %c0_8 = arith.constant 0 : index
    %c0_9 = arith.constant 0 : index
    %52 = vector.load %arg4[%c0_7, %c0_8, %c0_9] : memref<1x8x16xf32, #tpu.memory_space<vmem>>, vector<1x8x16xf32>
    %53 = vector.shape_cast %52 : vector<1x8x16xf32> to vector<8x16xf32>
    %54 = vector.shape_cast %51 : vector<8x16xf32> to vector<1x8x16xf32>
    tpu.vector_store %arg4[%c0_7, %c0_8, %c0_9], %54 {strides = array<i32>} : memref<1x8x16xf32, #tpu.memory_space<vmem>>, vector<1x8x16xf32>,
    return
  }
  func.func @transform_0(%arg0: i32, %arg1: memref<3xi32, #tpu.memory_space<smem>>) -> (i32, i32, i32) {
    %c0_i32 = arith.constant 0 : i32
    %c0_i32_0 = arith.constant 0 : i32
    %c0_i32_1 = arith.constant 0 : i32
    return %arg0, %c0_i32, %c0_i32_0 : i32, i32, i32
  }
  func.func @transform_1(%arg0: i32, %arg1: memref<3xi32, #tpu.memory_space<smem>>) -> (i32, i32, i32) {
    %0 = arith.index_cast %arg0 : i32 to index
    %1 = memref.load %arg1[%0] : memref<3xi32, #tpu.memory_space<smem>>
    %c0_i32 = arith.constant 0 : i32
    %c0_i32_0 = arith.constant 0 : i32
    %c0_i32_1 = arith.constant 0 : i32
    return %1, %c0_i32, %c0_i32_0 : i32, i32, i32
  }
  func.func @transform_2(%arg0: i32, %arg1: memref<3xi32, #tpu.memory_space<smem>>) -> (i32, i32, i32) {
    %c0_i32 = arith.constant 0 : i32
    %c0_i32_0 = arith.constant 0 : i32
    %c0_i32_1 = arith.constant 0 : i32
    return %arg0, %c0_i32, %c0_i32_0 : i32, i32, i32
  }
}

</mosaic_0001>

<bundles_post_ra>
// kernel: tpu_custom_call.1
= control target key start
LH: loop header
LB: loop body
LE: loop exit
PB: predicated region body
PF: predicated region fallthrough
CT: control target
= control target key end

     0   :  { %s731_s0 = inlined_call_operand.vmem [shape: s32[3], index: 0, kind: input, shape index: {}]   ;;  %s732_s1 = inlined_call_operand.vmem [shape: s32[3,8,8], index: 1, kind: input, shape index: {}]   ;;  %s733_s2 = inlined_call_operand.vmem [shape: f32[2,80,16], index: 2, kind: input, shape index: {}]   ;;  %s734_s3 = inlined_call_operand.hbm [shape: f32[3,8,16], index: 3, kind: output, shape index: {}]  }
   0x1   :  { %s8_s14 = sshll.u32 %s731_s0, 4  ;;  %s9_s14 = int_to_ptr.vmem [resolvable:$true] %s8_s14 }
   0x2   :  { %s502_s15 = scalar_lea.vmem %s9_s14, 16  ;;  %p507_p1 = scmp.lt.s32.totalorder %s9_s14, %s9_s14 }
   0x3   :  { %p503_p0 = scmp.ne.s32.totalorder %s9_s14, %s502_s15  ;;  %p508_p2 = scmp.lt.s32.totalorder %s502_s15, %s502_s15 }
   0x5   :  { %p509_p3 = por %p508_p2, %p507_p1 }
   0x7   :  { %p510_p4 = pnand %p509_p3, %p503_p0 }
   0x9   :  { %513 = shalt.err (!%p510_p4)  }
   0xa   :  { %s578_s16 = smov [#allocation3]  }
   0xb   :  { %11 = dma.vmem_to_smem %s9_s14, 16, %s578_s16, [#allocation2] }
   0xc   :  { %556 = dma.done.wait [#allocation2], 16 }
   0xd   :  { %557 = vsyncadd [#allocation2], 4294967280 }
   0xe   :  { %13 = sfence }
   0xf   :  { %14 = vsyncpa [#allocation5], 0 }
  0x10   :  { %16 = vsyncpa [#allocation5 + $0x1], 0  ;;  %s613_s17 = smov 0   ;;  %s615_s18 = smov 0  }
  0x11   :  { %s617_s0 = smov 0   ;;  %s619_s19 = smov 0  }
  0x12 LB: > { %s634_s20 = sadd.s32 4294967295, %s576_s19   ;;  %s396_s21 = sadd.s32 4294967294, %s576_s19   ;;  %s576_s19 = sphi %s619_s19, %s740_s19   ;;  %s572_s0 = sphi %s617_s0, %s739_s0   ;;  %s568_s18 = sphi %s615_s18, %s738_s18   ;;  %s564_s17 = sphi %s613_s17, %s737_s17  }
  0x13   : > { %s638_s22 = sadd.s32 1, %s576_s19   ;;  %s83_s23 = sadd.s32 1, %s572_s0 }
  0x14   : > { %s80_s24 = ssub.s32 %s576_s19, %s638_s22  ;;  %p93_p5 = scmp.ne.s32.totalorder %s572_s0, %s568_s18 }
  0x15   : > { %p81_p6 = scmp.eq.s32.totalorder %s80_s24, 0  ;;  %p94_p7 = scmp.eq.s32.totalorder %s634_s20, 2 }
  0x16   : > { %p99_p8 = scmp.ne.s32.totalorder %s568_s18, %s564_s17  ;;  %p100_p9 = scmp.eq.s32.totalorder %s396_s21, 2 }
  0x17   : > { %s649_s25 = scalar_select %p81_p6, %s572_s0, %s83_s23  }
  0x18   : > { %p651_p10 = por %p94_p7, %p93_p5  ;;  %p655_p11 = por %p100_p9, %p99_p8 }
  0x19   : > { %p399_p12 = scmp.ge.s32.totalorder %s576_s19, 1  ;;  %p135_p13 = scmp.lt.s32.totalorder %s576_s19, 4 }
  0x1b   : > { %p136_p0 = pnand %p399_p12, %p135_p13 }
  0x1c   : > { %p162_p1 = scmp.lt.s32.totalorder (!%p136_p0), %s634_s20, 2  ;;  %s166_s28 = sld [smem:[#allocation3 + %s634_s20]] (!%p136_p0) }
  0x1d   : > { %139 = sbr.rel (%p136_p0) target bundleno = 397 (0x18d), region = 28  ;;  %s159_s11 = sand.u32 (!%p136_p0), 1, %s568_s18  }
  0x1e   : > { %s400_s12 = sshll.u32 (!%p136_p0), %s159_s11, 3  ;;  %s405_s13 = sshll.u32 (!%p136_p0), %s634_s20, 7 }
  0x1f   : > { %s161_s14 = scalar_lea.vmem (!%p136_p0), [#allocation4], %s400_s12  ;;  %s696_s23 = scalar_lea.hbm (!%p136_p0), %s734_s3, %s405_s13 }
  0x20   : > { %s325_s15 = sshll.u32 (!%p136_p0), %s161_s14, 4  ;;  %s312_s24 = scalar_lea.sflag (!%p136_p0), [#allocation5], %s159_s11  ;;  %s326_s15 = int_to_ptr.vmem [resolvable:$true] %s325_s15 }
  0x22   : > { %v579_v0 = vmov 2   ;;  %v580_v1 = vmov 0   ;;  %s163_s29 = scalar_select %p162_p1, %s634_s20, 2  ;;  %v581_v3 = vmov 0.0   ;;  %v582_v4 = vmov 3  }
  0x23   : > { %495 = vset.pattern.permute.xlu1 %v579_v0  ;;  %493 = vset.pattern.permute.xlu0 %v580_v1  ;;  %p167_p2 = scmp.lt.s32.totalorder %s166_s28, 1  ;;  %v583_v5 = vmov 1   ;;  %v584_v8 = vmov 4   ;;  %v585_v9 = vmov 5   ;;  %v586_v12 = vmov 6   ;;  %s589_s20 = smov [#allocation4]  }
  0x24   : > { %s401_s30 = sshll.u32 %s163_s29, 3  ;;  %419 = vmatprep.subr.mxu0 %v581_v3  ;;  %v587_v15 = vmov 7   ;;  %vm588_vm0 = vmmov 0   ;;  %v174_v20 = vlaneseq  ;;  %vm234_vm9 = vcmask 654336   ;;  %s518_s29 = sshll.u32 %s589_s20, 4  ;;  %s519_s29 = int_to_ptr.vmem [resolvable:$false] %s518_s29 }
  0x25   : > { %s165_s6 = scalar_lea.vmem %s732_s1, %s401_s30  ;;  %s742_s28 = smov (!%p167_p2, %s166_s28), 1  ;;  %439 = vmatprep.mubr.msk.f32.mxu0 %vm588_vm0, %v581_v3  ;;  %vm309_vm10 = vcmask 130048  }
  0x26   : > { %v173_v2 = vld [vmem:[%s165_s6] sm:$0xff]  ;;  %s442_s7 = smul.u32 80, %s742_s28  ;;  %v175_v23 = vand.u32 127, %v174_v20  ;;  %s514_s28 = scalar_lea.vmem %s326_s15, 128 }
  0x27   : > { %188 = vperm.xlu1 %495, %v173_v2   ;;  %177 = vperm.xlu0 %493, %v173_v2   ;;  %p515_p3 = scmp.ne.s32.totalorder %s326_s15, %s514_s28  ;;  %s520_s30 = scalar_lea.vmem %s519_s29, 256 }
  0x28   : > { %s671_s10 = scalar_lea.vmem %s733_s2, %s442_s7  ;;  %p521_p6 = scmp.lt.s32.totalorder %s326_s15, %s519_s29 }
  0x29   : > { %v233_v6 = vld [vmem:[%s671_s10 + $0x48] sm:$0xff]  ;;  %v232_v7 = vld [vmem:[%s671_s10 + $0x40] sm:$0xff]  ;;  %v231_v10 = vld [vmem:[%s671_s10 + $0x38] sm:$0xff]  ;;  %p516_p4 = pnand %p515_p3, %p651_p10  ;;  %p522_p7 = scmp.lt.s32.totalorder %s520_s30, %s514_s28 }
  0x2a   : > { %420 = vmatpush3.msra.mxu0 %v233_v6  ;;  %v230_v11 = vld [vmem:[%s671_s10 + $0x30] sm:$0xff]  ;;  %v229_v13 = vld [vmem:[%s671_s10 + $0x28] sm:$0xff]  ;;  %v228_v14 = vld [vmem:[%s671_s10 + $0x20] sm:$0xff] }
  0x2b   : > { %496 = vset.pattern.permute.xlu1 %v582_v4  ;;  %494 = vset.pattern.permute.xlu0 %v583_v5  ;;  %v227_v16 = vld [vmem:[%s671_s10 + $0x18] sm:$0xff]  ;;  %v226_v17 = vld [vmem:[%s671_s10 + $0x10] sm:$0xff]  ;;  %v225_v18 = vld [vmem:[%s671_s10 + $0x8] sm:$0xff]  ;;  %p517_p5 = pneg %p516_p4  ;;  %p523_p8 = por %p522_p7, %p521_p6 }
  0x2c   : > { %194 = vperm.xlu1 %496, %v173_v2   ;;  %182 = vperm.xlu0 %494, %v173_v2   ;;  %v224_v19 = vld [vmem:[%s671_s10] sm:$0xff] }
  0x2d   : > { %421 = vmatprep.subr.mxu0 %v581_v3  ;;  %p524_p9 = pnand %p523_p8, %p517_p5 }
  0x2e   : > { %422 = vmatpush3.msra.mxu0 %v232_v7 }
  0x2f   : > { %423 = vmatprep.subr.mxu0 %v581_v3 }
  0x30   : > { %497 = vset.pattern.permute.xlu1 %v584_v8  ;;  %498 = vset.pattern.permute.xlu0 %v585_v9 }
  0x31   : > { %200 = vperm.xlu1 %497, %v173_v2   ;;  %206 = vperm.xlu0 %498, %v173_v2  }
  0x32   : > { %424 = vmatpush3.msra.mxu0 %v231_v10 }
  0x33   : > { %425 = vmatprep.subr.mxu0 %v581_v3 }
  0x34   : > { %426 = vmatpush3.msra.mxu0 %v230_v11 }
  0x35   : > { %499 = vset.pattern.permute.xlu1 %v586_v12  ;;  %427 = vmatprep.subr.mxu0 %v581_v3 }
  0x36   : > { %212 = vperm.xlu1 %499, %v173_v2   ;;  %501 = vset.pattern.permute.xlu0 %v587_v15 }
  0x37   : > { %428 = vmatpush3.msra.mxu0 %v229_v13 }
  0x38   : > { %429 = vmatprep.subr.mxu0 %v581_v3 }
  0x39   : > { %430 = vmatpush3.msra.mxu0 %v228_v14 }
  0x3a   : > { %500 = vset.pattern.permute.xlu1 %v587_v15  ;;  %431 = vmatprep.subr.mxu0 %v581_v3 }
  0x3b   : > { %218 = vperm.xlu1 %500, %v173_v2   ;;  %432 = vmatpush3.msra.mxu0 %v227_v16 }
  0x3c   : > { %433 = vmatprep.subr.mxu0 %v581_v3 }
  0x3d   : > { %434 = vmatpush3.msra.mxu0 %v226_v17 }
  0x3e   : > { %435 = vmatprep.subr.mxu0 %v581_v3 }
  0x3f   : > { %436 = vmatpush3.msra.mxu0 %v225_v18 }
  0x40   : > { %437 = vmatprep.subr.mxu0 %v581_v3 }
  0x41   : > { %438 = vmatpush3.msra.mxu0 %v224_v19 }
  0xa2   : > { %v189_v21 = vpop.permute.xlu1 %188  ;;  %v178_v22 = vpop.permute.xlu0 %177 }
  0xa3   : > { %vm179_vm1 = vcmp.eq.s32.totalorder %v178_v22, %v175_v23  ;;  %vm190_vm2 = vcmp.eq.s32.totalorder %v189_v21, %v175_v23 }
  0xa4   : > { %v180_v26 = vsel %vm179_vm1, 1, %v580_v1  ;;  %v191_v29 = vsel %vm190_vm2, 1, %v580_v1 }
  0xa7   : > { %v195_v24 = vpop.permute.xlu1 %194  ;;  %v183_v25 = vpop.permute.xlu0 %182 }
  0xa8   : > { %vm184_vm3 = vcmp.eq.s32.totalorder %v183_v25, %v175_v23  ;;  %vm196_vm4 = vcmp.eq.s32.totalorder %v195_v24, %v175_v23 }
  0xa9   : > { %v185_v27 = vsel %vm184_vm3, 1, %v580_v1  ;;  %v197_v33 = vsel %vm196_vm4, 1, %v580_v1 }
  0xaa   : > { %v186_v28 = vadd.s32 %v185_v27, %v180_v26 }
  0xac   : > { %v192_v30 = vadd.s32 %v191_v29, %v186_v28  ;;  %v201_v31 = vpop.permute.xlu1 %200  ;;  %v207_v32 = vpop.permute.xlu0 %206 }
  0xad   : > { %vm202_vm5 = vcmp.eq.s32.totalorder %v201_v31, %v175_v23  ;;  %vm208_vm6 = vcmp.eq.s32.totalorder %v207_v32, %v175_v23 }
  0xae   : > { %v198_v34 = vadd.s32 %v197_v33, %v192_v30  ;;  %v203_v35 = vsel %vm202_vm5, 1, %v580_v1  ;;  %v209_v37 = vsel %vm208_vm6, 1, %v580_v1 }
  0xb0   : > { %v204_v36 = vadd.s32 %v203_v35, %v198_v34 }
  0xb1   : > { %v213_v38 = vpop.permute.xlu1 %212 }
  0xb2   : > { %vm214_vm7 = vcmp.eq.s32.totalorder %v213_v38, %v175_v23  ;;  %v210_v39 = vadd.s32 %v209_v37, %v204_v36 }
  0xb3   : > { %v215_v40 = vsel %vm214_vm7, 1, %v580_v1 }
  0xb4   : > { %v216_v42 = vadd.s32 %v215_v40, %v210_v39 }
  0xb6   : > { %v219_v41 = vpop.permute.xlu1 %218 }
  0xb7   : > { %vm220_vm8 = vcmp.eq.s32.totalorder %v219_v41, %v175_v23 }
  0xb8   : > { %v221_v43 = vsel %vm220_vm8, 1, %v580_v1 }
  0xb9   : > { %v222_v44 = vadd.s32 %v221_v43, %v216_v42 }
  0xbb   : > { %v223_v45 = vcvt.s32.f32 %v222_v44 }
  0xbd   : > { %440 = vmatmul.mubr.msk.f32.vlgmr.msra.gmra.mxu0 %vm234_vm9, %v223_v45 }
 0x17d   : > { %v304_v46 = vpop.f32.mrf.mxu0 }
 0x17e   : > { %v308_v47 = vmul.f32 0.125, %v304_v46 }
 0x17f   : > { %v441_v48 = vpop.f32.mrf.mxu0 }
 0x180   : > { %310 = vst.msk [vmem:[%s161_s14] sm:$0xff] %vm309_vm10, %v308_v47 }
 0x181   : > { %527 = shalt.err (!%p524_p9)
}
 0x182   : > { %s528_s4 = scalar_lea.hbm %s696_s23, 128  ;;  %s532_s7 = scalar_lea.hbm %s734_s3, 384 }
 0x183   : > { %p529_p12 = scmp.ne.s32.totalorder %s696_s23, %s528_s4  ;;  %p533_p1 = scmp.lt.s32.totalorder %s696_s23, %s734_s3 }
 0x184   : > { %p534_p2 = scmp.lt.s32.totalorder %s532_s7, %s528_s4 }
 0x185   : > { %p530_p13 = pnand %p529_p12, %p651_p10 }
 0x186   : > { %p535_p3 = por %p534_p2, %p533_p1 }
 0x187   : > { %p531_p0 = pneg %p530_p13 }
 0x189   : > { %p536_p4 = pnand %p535_p3, %p531_p0 }
 0x18b   : > { %539 = shalt.err (!%p536_p4)
}
 0x18c   : > { %443 = dma.vmem_to_hbm [thread:$0]  (%p651_p10), %s326_s15, 128, %s696_s23, %s312_s24  }
 0x18d PF: > { %p449_p5 = scmp.ge.s32.totalorder %s576_s19, 2  ;;  %s337_s10 = sand.u32 1, %s564_s17  }
 0x18e   : > { %s338_s11 = scalar_lea.sflag [#allocation5], %s337_s10 }
 0x18f   : > { %p446_p6 = pnand %p449_p5, %p655_p11 }
 0x191   : > { %p447_p7 = pneg %p446_p6 }
 0x193   : > { %559 = dma.done.wait (%p447_p7), %s338_s11, 128  }
 0x194   : > { %561 = vsyncadd (%p447_p7), %s338_s11, 4294967168  ;;  %p19_p8 = scmp.ge.s32.totalorder %s638_s22, 5   ;;  %s737_s17 = smov %s568_s18 }
 0x195   : > { %s738_s18 = smov %s572_s0  ;;  %s739_s0 = smov %s649_s25 }
 0x196   : > { %s740_s19 = smov %s638_s22  ;;  %21 = sbr.rel (!%p19_p8) target bundleno = 18 (0x12), region = 66 }
 0x19b   :  { %343 = vsyncpa [#allocation5], 1 }
 0x19c   :  { %345 = vsyncpa [#allocation5 + $0x1], 1 }

</bundles_post_ra>
